<compile_context>
chip_gen: v6e
topology: v6e:2x2x1
jax: 0.10.0
libtpu: 0.0.40
codegen_flags: <defaults>
</compile_context>

<pallas_src>
import jax
import jax.numpy as jnp
from jax import lax
from jax.experimental import pallas as pl
from jax.experimental.pallas import tpu as pltpu

_EPS = 1e-6
_LANES = 128
_SUBLANES = 8
_BLOCK_ROWS = 2048     # (2048, 128) f32 block = 1 MiB per input per buffer
_NUM_CORES = 2         # parallel split degree (useful on v7x, harmless elsewhere)


def _round_up(a, b):
    return ((a + b - 1) // b) * b


def _fold_rows(block_rows):
    """Largest multiple of 8 (<= 64) that divides block_rows -> accumulator rows."""
    m = block_rows // _SUBLANES
    for d in (8, 4, 2, 1):
        if m % d == 0:
            return _SUBLANES * d
    return _SUBLANES


def _make_kernel(n_valid, block_rows, blocks_per_core, total_blocks, acc_rows):
    needs_mask = (total_blocks * block_rows * _LANES) != n_valid
    n_folds = block_rows // acc_rows

    def kernel(x_ref, y_ref, out_ref, acc_ref):
        i = pl.program_id(1)

        @pl.when(i == 0)
        def _():
            acc_ref[...] = jnp.zeros_like(acc_ref)

        diff = x_ref[...].astype(jnp.float32) - y_ref[...].astype(jnp.float32)
        err = jnp.sqrt(diff * diff + jnp.float32(_EPS))

        if needs_mask:
            # Zero contributions from padded / out-of-range elements of the
            # (partial) last block.  Statically skipped when not needed.
            blk = pl.program_id(0) * blocks_per_core + i
            row = lax.broadcasted_iota(jnp.int32, (block_rows, _LANES), 0)
            lane = lax.broadcasted_iota(jnp.int32, (block_rows, _LANES), 1)
            flat = blk * (block_rows * _LANES) + row * _LANES + lane
            err = jnp.where(flat < n_valid, err, 0.0)

        # Pure-VPU fold of this block into the wide accumulator.
        part = err[0:acc_rows, :]
        for g in range(1, n_folds):
            part = part + err[g * acc_rows:(g + 1) * acc_rows, :]
        acc_ref[...] += part

        @pl.when(i == pl.num_programs(1) - 1)
        def _():
            out_ref[...] = acc_ref[...]

    return kernel


def charbonnier_loss(x: jax.Array, y: jax.Array) -> jax.Array:
    """Pallas implementation of Charbonnier loss: sum(sqrt((x-y)^2 + 1e-6))."""
    assert x.shape == y.shape
    n = int(x.size)
    xf = x.reshape(-1)
    yf = y.reshape(-1)

    pad = (-n) % _LANES
    if pad:
        # TODO(synk): rare path (element count not a multiple of 128) pads each
        # input once; the in-kernel mask keeps the result exact (no sqrt(eps)
        # correction needed).
        xf = jnp.pad(xf, (0, pad))
        yf = jnp.pad(yf, (0, pad))
    rows = (n + pad) // _LANES

    block_rows = min(_BLOCK_ROWS, _round_up(rows, _SUBLANES))
    total_blocks = -(-rows // block_rows)
    if total_blocks >= _NUM_CORES and total_blocks % _NUM_CORES == 0:
        num_partials = _NUM_CORES
    else:
        num_partials = 1
    blocks_per_core = total_blocks // num_partials
    acc_rows = _fold_rows(block_rows)

    x2 = xf.reshape(rows, _LANES)
    y2 = yf.reshape(rows, _LANES)

    kernel = _make_kernel(n, block_rows, blocks_per_core, total_blocks, acc_rows)

    in_spec = pl.BlockSpec((block_rows, _LANES),
                           lambda c, i: (c * blocks_per_core + i, 0))

    out = pl.pallas_call(
        kernel,
        out_shape=jax.ShapeDtypeStruct((num_partials * acc_rows, _LANES),
                                       jnp.float32),
        grid_spec=pltpu.PrefetchScalarGridSpec(
            num_scalar_prefetch=0,
            grid=(num_partials, blocks_per_core),
            in_specs=[in_spec, in_spec],
            out_specs=pl.BlockSpec((acc_rows, _LANES), lambda c, i: (c, 0)),
            scratch_shapes=[pltpu.VMEM((acc_rows, _LANES), jnp.float32)],
        ),
        compiler_params=pltpu.CompilerParams(
            dimension_semantics=("parallel", "arbitrary"),
        ),
        cost_estimate=pl.CostEstimate(
            flops=3 * n,
            transcendentals=n,
            bytes_accessed=int(x.size) * x.dtype.itemsize
            + int(y.size) * y.dtype.itemsize
            + num_partials * acc_rows * _LANES * 4,
        ),
    )(x2, y2)

    # Tiny final reduce (a few KB) done once outside the kernel.
    return jnp.sum(out)


if __name__ == "__main__":
    key = jax.random.PRNGKey(0)
    kx, ky = jax.random.split(key)
    shape = (2, 4, 16, 16)  # NCHW, same as the PyTorch module would receive
    X = jax.random.normal(kx, shape, dtype=jnp.float32)
    Y = jax.random.normal(ky, shape, dtype=jnp.float32)

    loss = charbonnier_loss(X, Y)
    jax.block_until_ready(loss)

    # reference check in plain JAX
    ref = jnp.sum(jnp.sqrt((X - Y) ** 2 + _EPS))
    assert jnp.allclose(loss, ref, rtol=1e-5, atol=1e-5), (loss, ref)

    print("KERNEL_OK")
</pallas_src>

<mosaic_0001>
module attributes {stable_mosaic.version = 11 : i64} {
  func.func @kernel(%arg0: i32, %arg1: i32, %arg2: memref<16x128xf32, #tpu.memory_space<vmem>>, %arg3: memref<16x128xf32, #tpu.memory_space<vmem>>, %arg4: memref<16x128xf32, #tpu.memory_space<vmem>>, %arg5: memref<16x128xf32, #tpu.memory_space<vmem>>) attributes {dimension_semantics = [#tpu.dimension_semantics<parallel>, #tpu.dimension_semantics<arbitrary>], iteration_bounds = array<i64: 1, 1>, scalar_prefetch = 0 : i64, scratch_operands = 1 : i64, tpu.core_type = #tpu.core_type<tc>, window_params = [{transform_indices = @transform_0, window_bounds = array<i64: 16, 128>}, {transform_indices = @transform_1, window_bounds = array<i64: 16, 128>}, {transform_indices = @transform_2, window_bounds = array<i64: 16, 128>}]} {
    %c0_i32 = arith.constant 0 : i32
    %0 = arith.cmpi eq, %arg1, %c0_i32 : i32
    %1 = arith.extui %0 : i1 to i32
    %c0_i32_0 = arith.constant 0 : i32
    %2 = arith.cmpi ne, %1, %c0_i32_0 : i32
    scf.if %2 {
      %cst_10 = arith.constant 0.000000e+00 : f32
      %16 = vector.broadcast %cst_10 : f32 to vector<16x128xf32>
      %c0_11 = arith.constant 0 : index
      %c0_12 = arith.constant 0 : index
      %17 = vector.load %arg5[%c0_11, %c0_12] : memref<16x128xf32, #tpu.memory_space<vmem>>, vector<16x128xf32>
      tpu.vector_store %arg5[%c0_11, %c0_12], %16 {strides = array<i32>} : memref<16x128xf32, #tpu.memory_space<vmem>>, vector<16x128xf32>,
    } else {
    }
    %c0 = arith.constant 0 : index
    %c0_1 = arith.constant 0 : index
    %3 = vector.load %arg2[%c0, %c0_1] : memref<16x128xf32, #tpu.memory_space<vmem>>, vector<16x128xf32>
    %c0_2 = arith.constant 0 : index
    %c0_3 = arith.constant 0 : index
    %4 = vector.load %arg3[%c0_2, %c0_3] : memref<16x128xf32, #tpu.memory_space<vmem>>, vector<16x128xf32>
    %5 = arith.subf %3, %4 : vector<16x128xf32>
    %6 = arith.mulf %5, %5 : vector<16x128xf32>
    %cst = arith.constant 9.99999997E-7 : f32
    %7 = vector.broadcast %cst : f32 to vector<16x128xf32>
    %8 = arith.addf %6, %7 : vector<16x128xf32>
    %9 = math.sqrt %8 : vector<16x128xf32>
    %c0_4 = arith.constant 0 : index
    %c0_5 = arith.constant 0 : index
    %10 = vector.load %arg5[%c0_4, %c0_5] : memref<16x128xf32, #tpu.memory_space<vmem>>, vector<16x128xf32>
    %11 = arith.addf %10, %9 : vector<16x128xf32>
    %c0_6 = arith.constant 0 : index
    %c0_7 = arith.constant 0 : index
    %12 = vector.load %arg5[%c0_6, %c0_7] : memref<16x128xf32, #tpu.memory_space<vmem>>, vector<16x128xf32>
    tpu.vector_store %arg5[%c0_6, %c0_7], %11 {strides = array<i32>} : memref<16x128xf32, #tpu.memory_space<vmem>>, vector<16x128xf32>,
    %c0_i32_8 = arith.constant 0 : i32
    %13 = arith.cmpi eq, %arg1, %c0_i32_8 : i32
    %14 = arith.extui %13 : i1 to i32
    %c0_i32_9 = arith.constant 0 : i32
    %15 = arith.cmpi ne, %14, %c0_i32_9 : i32
    scf.if %15 {
      %c0_10 = arith.constant 0 : index
      %c0_11 = arith.constant 0 : index
      %16 = vector.load %arg5[%c0_10, %c0_11] : memref<16x128xf32, #tpu.memory_space<vmem>>, vector<16x128xf32>
      %c0_12 = arith.constant 0 : index
      %c0_13 = arith.constant 0 : index
      %17 = vector.load %arg4[%c0_12, %c0_13] : memref<16x128xf32, #tpu.memory_space<vmem>>, vector<16x128xf32>
      tpu.vector_store %arg4[%c0_12, %c0_13], %16 {strides = array<i32>} : memref<16x128xf32, #tpu.memory_space<vmem>>, vector<16x128xf32>,
    } else {
    }
    return
  }
  func.func @transform_0(%arg0: i32, %arg1: i32) -> (i32, i32) {
    %c1_i32 = arith.constant 1 : i32
    %0 = arith.muli %arg0, %c1_i32 : i32
    %1 = arith.addi %0, %arg1 : i32
    %c0_i32 = arith.constant 0 : i32
    %c0_i32_0 = arith.constant 0 : i32
    return %1, %c0_i32 : i32, i32
  }
  func.func @transform_1(%arg0: i32, %arg1: i32) -> (i32, i32) {
    %c1_i32 = arith.constant 1 : i32
    %0 = arith.muli %arg0, %c1_i32 : i32
    %1 = arith.addi %0, %arg1 : i32
    %c0_i32 = arith.constant 0 : i32
    %c0_i32_0 = arith.constant 0 : i32
    return %1, %c0_i32 : i32, i32
  }
  func.func @transform_2(%arg0: i32, %arg1: i32) -> (i32, i32) {
    %c0_i32 = arith.constant 0 : i32
    %c0_i32_0 = arith.constant 0 : i32
    return %arg0, %c0_i32 : i32, i32
  }
}

</mosaic_0001>

<bundles_post_ra>
// kernel: tpu_custom_call.1
= control target key start
LH: loop header
LB: loop body
LE: loop exit
PB: predicated region body
PF: predicated region fallthrough
CT: control target
= control target key end

     0   :  { %7 = vsyncpa [#allocation4], 0  ;;  %s226_s0 = inlined_call_operand.hbm [shape: f32[16,128], index: 0, kind: input, shape index: {}]   ;;  %s227_s1 = inlined_call_operand.hbm [shape: f32[16,128], index: 1, kind: input, shape index: {}]   ;;  %s228_s2 = inlined_call_operand.hbm [shape: f32[16,128], index: 2, kind: output, shape index: {}]  }
   0x1   :  { %8 = vsyncpa [#allocation7], 0 }
   0x2   :  { %9 = vsyncpa [#allocation5], 0  ;;  %s188_s9 = smov [#allocation3]  }
   0x3   :  { %s19_s10 = sshll.u32 %s188_s9, 4  ;;  %s20_s10 = int_to_ptr.vmem [resolvable:$true] %s19_s10 }
   0x4   :  { %s130_s11 = scalar_lea.vmem %s20_s10, 256  ;;  %p135_p1 = scmp.lt.s32.totalorder %s20_s10, %s20_s10 }
   0x5   :  { %p131_p0 = scmp.ne.s32.totalorder %s20_s10, %s130_s11  ;;  %p136_p2 = scmp.lt.s32.totalorder %s130_s11, %s130_s11 }
   0x7   :  { %p137_p3 = por %p136_p2, %p135_p1 }
   0x9   :  { %p138_p4 = pnand %p137_p3, %p131_p0 }
   0xb   :  { %141 = shalt.err (!%p138_p4)
}
   0xc   :  { %s189_s12 = smov 128   ;;  %s190_s13 = smov 8  }
   0xd   :  { %25 = dma.hbm_to_vmem [thread:$0]  %s226_s0, 256, %s20_s10, [#allocation4], %s189_s12, %s189_s12, %s190_s13  }
   0xe   :  { %s191_s16 = smov [#allocation6]  }
   0xf   :  { %s35_s17 = sshll.u32 %s191_s16, 4  ;;  %s36_s17 = int_to_ptr.vmem [resolvable:$true] %s35_s17 }
  0x10   :  { %s150_s18 = scalar_lea.vmem %s36_s17, 256  ;;  %p155_p6 = scmp.lt.s32.totalorder %s36_s17, %s36_s17 }
  0x11   :  { %p151_p5 = scmp.ne.s32.totalorder %s36_s17, %s150_s18  ;;  %p156_p7 = scmp.lt.s32.totalorder %s150_s18, %s150_s18 }
  0x13   :  { %p157_p8 = por %p156_p7, %p155_p6 }
  0x15   :  { %p158_p9 = pnand %p157_p8, %p151_p5 }
  0x17   :  { %161 = shalt.err (!%p158_p9)
}
  0x18   :  { %41 = dma.hbm_to_vmem [thread:$0]  %s227_s1, 256, %s36_s17, [#allocation7], %s189_s12, %s189_s12, %s190_s13  }
  0x19   :  { %182 = dma.done.wait [#allocation4], 256  }
  0x1a   :  { %183 = vsyncadd [#allocation4], 4294967040 }
  0x1b   :  { %184 = dma.done.wait [#allocation7], 256  }
  0x1c   :  { %185 = vsyncadd [#allocation7], 4294967040  ;;  %v58_v0 = vld [vmem:[#allocation3] sm:$0xff]  ;;  %v60_v1 = vld [vmem:[#allocation6] sm:$0xff]  ;;  %s192_s0 = smov [#allocation8]  }
  0x1d   :  { %v59_v2 = vld [vmem:[#allocation3 + $0x8] sm:$0xff]  ;;  %v62_v3 = vsub.f32 %v58_v0, %v60_v1  ;;  %v61_v4 = vld [vmem:[#allocation6 + $0x8] sm:$0xff]  ;;  %s100_s1 = sshll.u32 %s192_s0, 4  ;;  %s101_s1 = int_to_ptr.vmem [resolvable:$true] %s100_s1 }
  0x1e   :  { %v63_v5 = vsub.f32 %v59_v2, %v61_v4  ;;  %s162_s21 = scalar_lea.vmem %s101_s1, 256  ;;  %p167_p11 = scmp.lt.s32.totalorder %s101_s1, %s101_s1 }
  0x1f   :  { %v64_v6 = vmul.f32 %v62_v3, %v62_v3  ;;  %p163_p10 = scmp.ne.s32.totalorder %s101_s1, %s162_s21  ;;  %p168_p12 = scmp.lt.s32.totalorder %s162_s21, %s162_s21 }
  0x20   :  { %v65_v7 = vmul.f32 %v63_v5, %v63_v5 }
  0x21   :  { %v66_v8 = vadd.f32 1e-06, %v64_v6  ;;  %p169_p13 = por %p168_p12, %p167_p11 }
  0x22   :  { %v67_v9 = vadd.f32 1e-06, %v65_v7 }
  0x23   :  { %118 = vrsqrt.f32 %v66_v8  ;;  %vm70_vm0 = vcmp.eq.f32.partialorder %v66_v8, inf  ;;  %v73_v11 = vand.u32 2147483648, %v66_v8  ;;  %vm72_vm1 = vcmp.eq.f32.partialorder %v66_v8, 0.0  ;;  %p170_p0 = pnand %p169_p13, %p163_p10 }
  0x24   :  { %120 = vrsqrt.f32 %v67_v9  ;;  %vm77_vm2 = vcmp.eq.f32.partialorder %v67_v9, inf  ;;  %v80_v14 = vand.u32 2147483648, %v67_v9  ;;  %vm79_vm3 = vcmp.eq.f32.partialorder %v67_v9, 0.0 }
  0x30   :  { %v119_v10 = vpop.eup %118 }
  0x31   :  { %v121_v12 = vpop.eup %120  ;;  %v69_v13 = vmul.f32 %v119_v10, %v66_v8 }
  0x32   :  { %v76_v15 = vmul.f32 %v121_v12, %v67_v9 }
  0x33   :  { %v71_v16 = vsel %vm70_vm0, %v66_v8, %v69_v13 }
  0x34   :  { %v74_v17 = vsel %vm72_vm1, %v73_v11, %v71_v16  ;;  %v78_v18 = vsel %vm77_vm2, %v67_v9, %v76_v15 }
  0x35   :  { %93 = vst [vmem:[#allocation8] sm:$0xff] %v74_v17  ;;  %v81_v19 = vsel %vm79_vm3, %v80_v14, %v78_v18 }
  0x36   :  { %94 = vst [vmem:[#allocation8 + $0x8] sm:$0xff] %v81_v19 }
  0x37   :  { %173 = shalt.err (!%p170_p0)
}
  0x38   :  { %106 = dma.vmem_to_hbm [thread:$0]  %s101_s1, 256, %s228_s2, [#allocation5], %s189_s12, %s189_s12, %s190_s13  }
  0x39   :  { %186 = dma.done.wait [#allocation5], 256  }
  0x3a   :  { %187 = vsyncadd [#allocation5], 4294967040 }
  0x3b   :  { %110 = vsyncpa [#allocation4], 1 }
  0x3c   :  { %111 = vsyncpa [#allocation7], 1 }
  0x3d   :  { %112 = vsyncpa [#allocation5], 1 }

</bundles_post_ra>
